<compile_context>
chip_gen: v5e
topology: v5e:2x2
jax: 0.10.0
libtpu: 0.0.40
codegen_flags: <defaults>
</compile_context>

<pallas_src>
import jax
import jax.numpy as jnp
from jax import lax
from jax.experimental import pallas as pl
from jax.experimental.pallas import tpu as pltpu


def _round_up(x, m):
    return ((x + m - 1) // m) * m


def _enc_kernel(w_ref, p_ref, o_ref):
    # w: (N, Kd) bf16, p: (1, Kd, tt) bf16 -> o: (1, N, tt) f32 (fp32 MXU accumulation).
    o_ref[0] = jnp.dot(w_ref[...], p_ref[0], preferred_element_type=jnp.float32)


def _choose_t_tile(T_out, B, tt_max=2048):
    """Pick the lane (T_out) tile size."""
    if B == 1 and T_out > 256:
        # Guarantee >= 2 lane-dense T blocks so both v7x TensorCores get work.
        return min(tt_max, _round_up(pl.cdiv(T_out, 2), 128))
    if T_out <= tt_max:
        return T_out            # one exact (full-dim) block per batch row, no padding
    return tt_max               # multiple of 128; last T block is ragged (OOB writes dropped)


def filterbank_conv(patches, w_mat, T_out, *, tt_max=2048):
    """out[b, :, t] = w_mat @ patches[b, :, t]  ->  (B, N, T_out) float32.

    patches: (B, Kd, >=T_out) bf16, T_out lane-major (minor axis).
    w_mat:   (N, Kd) bf16 (tiny; stays resident in VMEM across the whole grid).
    """
    B, Kd, _ = patches.shape
    N, Kd2 = w_mat.shape
    assert Kd == Kd2

    tt = _choose_t_tile(T_out, B, tt_max)
    gi = pl.cdiv(T_out, tt)
    T_pad = gi * tt
    if patches.shape[2] != T_pad:
        # Zero-pad T so all patch reads are in-bounds; the corresponding output columns
        # fall in the ragged part of the last block and are dropped by Pallas.
        patches = jnp.pad(patches, ((0, 0), (0, 0), (0, T_pad - patches.shape[2])))

    cost = pl.CostEstimate(
        flops=2 * B * N * Kd * T_pad,
        transcendentals=0,
        bytes_accessed=int(N * Kd * 2 + B * Kd * T_pad * 2 + B * N * T_out * 4),
    )

    return pl.pallas_call(
        _enc_kernel,
        out_shape=jax.ShapeDtypeStruct((B, N, T_out), jnp.float32),
        grid=(B, gi),
        in_specs=[
            pl.BlockSpec((N, Kd), lambda b, i: (0, 0)),         # stacked weights (fetched once)
            pl.BlockSpec((1, Kd, tt), lambda b, i: (b, 0, i)),  # lane-major patch tile
        ],
        out_specs=pl.BlockSpec((1, N, tt), lambda b, i: (b, 0, i)),
        compiler_params=pltpu.CompilerParams(
            dimension_semantics=("parallel", "parallel"),
            vmem_limit_bytes=32 * 1024 * 1024,
        ),
        cost_estimate=cost,
    )(w_mat, patches)


class MultiParEncPallas:
    """JAX/Pallas port of MultiParEnc.

    res_weights: list of (n_feats_i, 1, K) conv weights (rescoders, applied to channel 0)
    par_weights: list of (N_total, 1, K) conv weights (parcoders, applied to channels 1..)
    """

    def __init__(self, res_weights, par_weights, stride):
        self.stride = int(stride)
        self.resnum = len(res_weights)
        self.K = int(res_weights[0].shape[-1])
        self.n_feats_out = sum(int(w.shape[0]) for w in res_weights)
        self.n_par = len(par_weights)

        w0 = jnp.concatenate([jnp.asarray(w) for w in res_weights], axis=0)  # (N_total, 1, K)
        for pw in par_weights:
            assert pw.shape == (self.n_feats_out, 1, self.K)
        # Stack along input-channel axis: channel 0 -> concat(rescoders), channel j+1 ->
        # parcoder j.  Reproduces concat + elementwise add exactly for linear coders.
        W = jnp.concatenate([w0] + [jnp.asarray(pw) for pw in par_weights], axis=1)
        self.W = W.astype(jnp.bfloat16)                      # (N_total, 1 + n_par, K), bf16 once
        # NOTE: operands are bf16 (fp32 MXU accumulation); loosened tolerances vs fp32 PyTorch.

    def __call__(self, x):
        assert x.ndim == 3
        B, C, T = x.shape
        s, K = self.stride, self.K
        assert T >= K

        if C == 1:
            c_use = 1                                        # rescoders only (PyTorch early return)
        else:
            # PyTorch would index-error if x has fewer channels than 1 + n_parcoders;
            # extra trailing channels are ignored there, so mirror both behaviours.
            assert C >= 1 + self.n_par, (
                f"x has {C} channels but module expects >= {1 + self.n_par}")
            c_use = 1 + self.n_par

        N = self.n_feats_out
        T_out = (T - K) // s + 1

        # --- im2col via K dense strided slices (no gather), bf16, lane-major over T_out ---
        x_use = x[:, :c_use, :].astype(jnp.bfloat16)
        cols = [
            lax.slice_in_dim(x_use, k, k + (T_out - 1) * s + 1, stride=s, axis=2)
            for k in range(K)
        ]                                                    # each (B, c_use, T_out)
        patches = jnp.stack(cols, axis=2).reshape(B, c_use * K, T_out)   # (B, Kd, T_out)
        w_mat = self.W[:, :c_use, :].reshape(N, c_use * K)               # (N, Kd)

        # --- hot path: Pallas MXU matmul, writes (B, N, T_out) directly ---
        return filterbank_conv(patches, w_mat, T_out)


if __name__ == "__main__":
    key = jax.random.PRNGKey(0)

    # Small, deterministic synthetic configuration.
    B, C, T = 2, 3, 136          # 3 input channels -> 2 parcoders
    K, stride = 16, 8
    n_feats = [24, 40]           # two rescoders; N_total = 64
    N_total = sum(n_feats)
    T_out = (T - K) // stride + 1

    keys = jax.random.split(key, 8)
    x = jax.random.normal(keys[0], (B, C, T), dtype=jnp.float32)
    res_w = [
        0.1 * jax.random.normal(keys[1 + i], (nf, 1, K), dtype=jnp.float32)
        for i, nf in enumerate(n_feats)
    ]
    par_w = [
        0.1 * jax.random.normal(keys[3 + j], (N_total, 1, K), dtype=jnp.float32)
        for j in range(C - 1)
    ]

    enc = MultiParEncPallas(res_w, par_w, stride)
    out = jax.block_until_ready(enc(x))
    assert out.shape == (B, N_total, T_out), out.shape

    # Reference 1 (strict): same bf16-rounded operands, fp32 conv via XLA.
    W_full = jnp.concatenate([jnp.concatenate(res_w, axis=0)] + par_w, axis=1)
    x_q = x.astype(jnp.bfloat16).astype(jnp.float32)
    W_q = W_full.astype(jnp.bfloat16).astype(jnp.float32)
    ref_q = lax.conv_general_dilated(
        x_q, W_q, window_strides=(stride,), padding="VALID",
        dimension_numbers=("NCH", "OIH", "NCH"),
    )
    assert jnp.allclose(out, ref_q, atol=2e-3, rtol=2e-3), float(jnp.abs(out - ref_q).max())

    # Reference 2 (loose sanity): full fp32 conv; only bf16 rounding separates them.
    ref_f32 = lax.conv_general_dilated(
        x, W_full, window_strides=(stride,), padding="VALID",
        dimension_numbers=("NCH", "OIH", "NCH"),
    )
    assert jnp.allclose(out, ref_f32, atol=3e-2, rtol=3e-2), float(jnp.abs(out - ref_f32).max())

    # Single-channel path (PyTorch early-return branch): rescoders only.
    out1 = jax.block_until_ready(enc(x[:, :1, :]))
    ref1 = lax.conv_general_dilated(
        x_q[:, :1, :], W_q[:, :1, :], window_strides=(stride,), padding="VALID",
        dimension_numbers=("NCH", "OIH", "NCH"),
    )
    assert out1.shape == (B, N_total, T_out)
    assert jnp.allclose(out1, ref1, atol=2e-3, rtol=2e-3)

    # Multi-tile / ragged-T path (B=1 -> T axis split across >= 2 blocks, last block ragged).
    T_big = (300 - 1) * stride + K                 # T_out = 300 -> tt = 256, 2 T blocks
    x_big = jax.random.normal(keys[6], (1, C, T_big), dtype=jnp.float32)
    out_big = jax.block_until_ready(enc(x_big))
    ref_big = lax.conv_general_dilated(
        x_big.astype(jnp.bfloat16).astype(jnp.float32), W_q,
        window_strides=(stride,), padding="VALID",
        dimension_numbers=("NCH", "OIH", "NCH"),
    )
    assert out_big.shape == (1, N_total, 300)
    assert jnp.allclose(out_big, ref_big, atol=2e-3, rtol=2e-3), \
        float(jnp.abs(out_big - ref_big).max())

    print("KERNEL_OK")
</pallas_src>

<mosaic_0001>
module attributes {stable_mosaic.version = 11 : i64} {
  func.func @_enc_kernel(%arg0: i32, %arg1: i32, %arg2: memref<64x48xbf16, #tpu.memory_space<vmem>>, %arg3: memref<1x48x16xbf16, #tpu.memory_space<vmem>>, %arg4: memref<1x64x16xf32, #tpu.memory_space<vmem>>) attributes {dimension_semantics = [#tpu.dimension_semantics<parallel>, #tpu.dimension_semantics<parallel>], iteration_bounds = array<i64: 2, 1>, scalar_prefetch = 0 : i64, scratch_operands = 0 : i64, tpu.core_type = #tpu.core_type<tc>, window_params = [{pipeline_mode = #tpu.pipeline_mode<synchronous>, transform_indices = @transform_0, window_bounds = array<i64: 64, 48>}, {transform_indices = @transform_1, window_bounds = array<i64: 1, 48, 16>}, {transform_indices = @transform_2, window_bounds = array<i64: 1, 64, 16>}]} {
    %c0 = arith.constant 0 : index
    %c0_0 = arith.constant 0 : index
    %0 = vector.load %arg2[%c0, %c0_0] : memref<64x48xbf16, #tpu.memory_space<vmem>>, vector<64x48xbf16>
    %c0_1 = arith.constant 0 : index
    %c0_2 = arith.constant 0 : index
    %c0_3 = arith.constant 0 : index
    %1 = vector.load %arg3[%c0_1, %c0_2, %c0_3] : memref<1x48x16xbf16, #tpu.memory_space<vmem>>, vector<1x48x16xbf16>
    %2 = vector.shape_cast %1 : vector<1x48x16xbf16> to vector<48x16xbf16>
    %cst = arith.constant dense<0.000000e+00> : vector<64x16xf32>
    %3 = tpu.matmul %0, %2, %cst {dimension_numbers = #tpu.dot_dimension_numbers<[1], [0], [0], [1], [0, 0, 1, 1], [], []>} : vector<64x48xbf16>, vector<48x16xbf16>, vector<64x16xf32> -> vector<64x16xf32>
    %c0_4 = arith.constant 0 : index
    %c0_5 = arith.constant 0 : index
    %c0_6 = arith.constant 0 : index
    %4 = vector.load %arg4[%c0_4, %c0_5, %c0_6] : memref<1x64x16xf32, #tpu.memory_space<vmem>>, vector<1x64x16xf32>
    %5 = vector.shape_cast %4 : vector<1x64x16xf32> to vector<64x16xf32>
    %6 = vector.shape_cast %3 : vector<64x16xf32> to vector<1x64x16xf32>
    tpu.vector_store %arg4[%c0_4, %c0_5, %c0_6], %6 {strides = array<i32>} : memref<1x64x16xf32, #tpu.memory_space<vmem>>, vector<1x64x16xf32>,
    return
  }
  func.func @transform_0(%arg0: i32, %arg1: i32) -> (i32, i32) {
    %c0_i32 = arith.constant 0 : i32
    %c0_i32_0 = arith.constant 0 : i32
    %c0_i32_1 = arith.constant 0 : i32
    return %c0_i32, %c0_i32_0 : i32, i32
  }
  func.func @transform_1(%arg0: i32, %arg1: i32) -> (i32, i32, i32) {
    %c0_i32 = arith.constant 0 : i32
    %c0_i32_0 = arith.constant 0 : i32
    return %arg0, %c0_i32, %arg1 : i32, i32, i32
  }
  func.func @transform_2(%arg0: i32, %arg1: i32) -> (i32, i32, i32) {
    %c0_i32 = arith.constant 0 : i32
    %c0_i32_0 = arith.constant 0 : i32
    return %arg0, %c0_i32, %arg1 : i32, i32, i32
  }
}

</mosaic_0001>

<bundles_post_ra>
// kernel: tpu_custom_call.1
= control target key start
LH: loop header
LB: loop body
LE: loop exit
PB: predicated region body
PF: predicated region fallthrough
CT: control target
= control target key end

     0   :  { %s485_s9 = smov 0   ;;  %s487_s10 = smov 0   ;;  %s542_s0 = inlined_call_operand.vmem [shape: bf16[64,48], index: 0, kind: input, shape index: {}]   ;;  %s543_s1 = inlined_call_operand.vmem [shape: bf16[2,48,16], index: 1, kind: input, shape index: {}]   ;;  %s544_s2 = inlined_call_operand.vmem [shape: f32[2,64,16], index: 2, kind: output, shape index: {}]  }
   0x1   :  { %s489_s11 = smov 0  }
   0x2 LB: > { %s24_s12 = sadd.s32 1, %s464_s10  ;;  %p366_p0 = scmp.ge.s32.totalorder %s468_s11, 1  ;;  %s468_s11 = sphi %s489_s11, %s12_s11   ;;  %s464_s10 = sphi %s487_s10, %s546_s10   ;;  %s460_s9 = sphi %s485_s9, %s545_s9  }
   0x3   : > { %p26_p1 = scmp.ge.s32.totalorder %s24_s12, 2  ;;  %p131_p2 = scmp.lt.s32.totalorder %s468_s11, 3 }
   0x5   : > { %s548_s12 = smov (%p26_p1, %s24_s12), 0  ;;  %p132_p3 = pnand %p366_p0, %p131_p2 }
   0x6   : > { %p159_p4 = scmp.lt.s32.totalorder (!%p132_p3), %s460_s9, 1 }
   0x7   : > { %135 = sbr.rel (%p132_p3) target bundleno = 171 (0xab), region = 28 }
   0xc   : > { %s550_s9 = smov (!%p159_p4, %s460_s9), 1  ;;  %v405_v3 = vld [vmem:[%s542_s0] sm:$0xff]  ;;  %v406_v4 = vld [vmem:[%s542_s0 + $0x8] sm:$0xff]  ;;  %vm228_vm0 = vcmask 392192   ;;  %v407_v5 = vld [vmem:[%s542_s0 + $0x10] sm:$0xff]  ;;  %vm270_vm1 = vcmask 130048  }
   0xd   : > { %s421_s13 = smul.u32 24, %s550_s9  ;;  %v408_v6 = vld [vmem:[%s542_s0 + $0x18] sm:$0xff]  ;;  %s404_s25 = sshll.u32 %s550_s9, 6 }
   0xe   : > { %s174_s28 = scalar_lea.vmem %s544_s2, %s404_s25 }
   0xf   : > { %s166_s16 = scalar_lea.vmem %s543_s1, %s421_s13 }
  0x10   : > { %v411_v0 = vld [vmem:[%s166_s16 + $0x10] sm:$0xff]  ;;  %v410_v1 = vld [vmem:[%s166_s16 + $0x8] sm:$0xff]  ;;  %v409_v2 = vld [vmem:[%s166_s16] sm:$0xff] }
  0x11   : > { %246 = vmatpush.bf16.msra.mxu0 %v411_v0  ;;  %412 = vmatpush.bf16.msra.mxu1 %v411_v0 }
  0x12   : > { %413 = vmatpush.bf16.msra.mxu2 %v411_v0  ;;  %414 = vmatpush.bf16.msra.mxu3 %v411_v0 }
  0x15   : > { %247 = vmatpush.bf16.msra.mxu0 %v410_v1  ;;  %415 = vmatpush.bf16.msra.mxu1 %v410_v1 }
  0x16   : > { %416 = vmatpush.bf16.msra.mxu2 %v410_v1  ;;  %417 = vmatpush.bf16.msra.mxu3 %v410_v1 }
  0x19   : > { %248 = vmatpush.bf16.msra.mxu0 %v409_v2  ;;  %418 = vmatpush.bf16.msra.mxu1 %v409_v2 }
  0x1a   : > { %419 = vmatpush.bf16.msra.mxu2 %v409_v2  ;;  %420 = vmatpush.bf16.msra.mxu3 %v409_v2 }
  0x1c   : > { %398 = vmatmul.msk.bf16.vlgmr.msra.gmra.mxu0 %vm228_vm0, %v405_v3  ;;  %399 = vmatmul.msk.bf16.vlgmr.msra.gmra.mxu1 %vm228_vm0, %v406_v4 }
  0x1d   : > { %400 = vmatmul.msk.bf16.vlgmr.msra.gmra.mxu2 %vm228_vm0, %v407_v5  ;;  %401 = vmatmul.msk.bf16.vlgmr.msra.gmra.mxu3 %vm228_vm0, %v408_v6 }
  0x99   : > { %v250_v7 = vpop.f32.mrf.mxu0  ;;  %v255_v8 = vpop.f32.mrf.mxu1 }
  0x9a   : > { %271 = vst.msk [vmem:[%s174_s28] sm:$0xff] %vm270_vm1, %v250_v7 }
  0x9b   : > { %273 = vst.msk [vmem:[%s174_s28 + $0x10] sm:$0xff] %vm270_vm1, %v255_v8 }
  0xa0   : > { %v260_v9 = vpop.f32.mrf.mxu2  ;;  %v265_v10 = vpop.f32.mrf.mxu3 }
  0xa1   : > { %275 = vst.msk [vmem:[%s174_s28 + $0x20] sm:$0xff] %vm270_vm1, %v260_v9  ;;  %v252_v11 = vpop.f32.mrf.mxu0  ;;  %v257_v12 = vpop.f32.mrf.mxu1 }
  0xa2   : > { %277 = vst.msk [vmem:[%s174_s28 + $0x30] sm:$0xff] %vm270_vm1, %v265_v10 }
  0xa3   : > { %272 = vst.msk [vmem:[%s174_s28 + $0x8] sm:$0xff] %vm270_vm1, %v252_v11 }
  0xa4   : > { %274 = vst.msk [vmem:[%s174_s28 + $0x18] sm:$0xff] %vm270_vm1, %v257_v12 }
  0xa8   : > { %v262_v13 = vpop.f32.mrf.mxu2  ;;  %v267_v14 = vpop.f32.mrf.mxu3 }
  0xa9   : > { %276 = vst.msk [vmem:[%s174_s28 + $0x28] sm:$0xff] %vm270_vm1, %v262_v13 }
  0xaa   : > { %278 = vst.msk [vmem:[%s174_s28 + $0x38] sm:$0xff] %vm270_vm1, %v267_v14 }
  0xab PF: > { %s12_s11 = sadd.s32 1, %s468_s11   ;;  %s545_s9 = smov %s464_s10 }
  0xac   : > { %p9_p5 = scmp.ge.s32.totalorder %s12_s11, 4   ;;  %s546_s10 = smov %s548_s12 }
  0xae   :  { %11 = sbr.rel (!%p9_p5) target bundleno = 2 (0x2), region = 58 }

</bundles_post_ra>
